<compile_context>
chip_gen: v6e
topology: v6e:2x2x1
jax: 0.10.0
libtpu: 0.0.40
codegen_flags: <defaults>
</compile_context>

<pallas_src>
import functools

import jax
import jax.numpy as jnp
from jax.experimental import pallas as pl
from jax.experimental.pallas import tpu as pltpu


# ----------------------------- helpers --------------------------------------
def _round_up(x: int, m: int) -> int:
    return ((x + m - 1) // m) * m


def _pick_tile(dim: int, align: int, target: int):
    """Pick (tile, padded_dim) with tile % align == 0 and padded_dim % tile == 0."""
    padded = _round_up(max(dim, 1), align)
    target = _round_up(min(max(target, align), padded), align)
    nblocks = pl.cdiv(padded, target)
    tile = _round_up(pl.cdiv(padded, nblocks), align)
    return tile, nblocks * tile


def _vmem_capacity_bytes() -> int:
    try:
        return int(pltpu.get_tpu_info().vmem_capacity_bytes)
    except Exception:
        return 64 << 20  # conservative (v7x) fallback


def _num_tensorcores() -> int:
    try:
        info = pltpu.get_tpu_info()
        for attr in ("num_cores", "core_count", "num_tensorcores", "tensorcore_count"):
            if hasattr(info, attr):
                return int(getattr(info, attr))
    except Exception:
        pass
    return 1  # safe default: no split on unknown hardware


def _plan_tiles(D, out_dim, dtype, tm_target, tn_target, tk_target):
    """Static tile plan bounded by a per-generation VMEM budget."""
    is_bf16 = jnp.dtype(dtype) == jnp.dtype(jnp.bfloat16)
    m_align = 16 if is_bf16 else 8
    itemsize = jnp.dtype(dtype).itemsize

    vmem = _vmem_capacity_bytes()
    budget = max(12 << 20, vmem // 2 - (4 << 20))

    tm_t = max(m_align, _round_up(tm_target, m_align))
    tn_t = max(128, tn_target)
    tk_t = max(128, tk_target)

    while True:
        tn, o_pad = _pick_tile(out_dim, 128, tn_t)
        tk, k_pad = _pick_tile(D, 128, tk_t)
        tm = tm_t
        # double-buffered input tiles + double-buffered f32 output + bias tile
        ws = 2 * (tm * tk + tk * tn) * itemsize + 2 * tm * tn * 4 + 2 * tn * 4
        if ws <= budget or (tm <= m_align and tn <= 128 and tk <= 128):
            break
        if tk > 256 and tk >= tn:
            tk_t = max(256, tk // 2)
        elif tn > 256:
            tn_t = max(256, tn // 2)
        elif tm > m_align:
            tm_t = max(m_align, _round_up(tm // 2, m_align))
        elif tk > 128:
            tk_t = max(128, tk // 2)
        elif tn > 128:
            tn_t = max(128, tn // 2)
        else:
            break

    vmem_limit = int(min(max(32 << 20, ws + (8 << 20)), 56 << 20))
    return tm_t, tn, tk, o_pad, k_pad, m_align, vmem_limit


# ----------------------------- Pallas kernels -------------------------------
def _make_kernel(multi_k: bool):
    """Fused matmul + bias + tanh. Bias arrives as a (1, tn) blocked tile."""
    if multi_k:
        def kernel(x_ref, wt_ref, b_ref, o_ref):
            k = pl.program_id(2)
            last = pl.num_programs(2) - 1
            acc = jnp.dot(x_ref[...], wt_ref[...],
                          preferred_element_type=jnp.float32)

            @pl.when(k == 0)
            def _():
                # First K step: write the partial product (no zero-init store).
                o_ref[...] = acc

            @pl.when(jnp.logical_and(k > 0, k < last))
            def _():
                o_ref[...] += acc

            @pl.when(jnp.logical_and(k > 0, k == last))
            def _():
                # Fused epilogue on the final K step: one pass over the block.
                o_ref[...] = jnp.tanh(o_ref[...] + acc + b_ref[...])
    else:
        def kernel(x_ref, wt_ref, b_ref, o_ref):
            o_ref[...] = jnp.tanh(
                jnp.dot(x_ref[...], wt_ref[...],
                        preferred_element_type=jnp.float32)
                + b_ref[...]
            )
    return kernel


# ----------------------------- forward (jitted) ------------------------------
@functools.partial(
    jax.jit,
    static_argnames=("out_dim", "d", "tm_cap", "tn", "tk", "m_align", "vmem_limit"),
)
def _swim_forward(x, wt, b2, *, out_dim, d, tm_cap, tn, tk, m_align, vmem_limit):
    N, D = x.shape
    assert D == d, "activation feature dim does not match prepared weights"
    k_pad, o_pad = wt.shape
    gn, gk = o_pad // tn, k_pad // tk

    # M tile: derived from the actual batch at trace time, dtype-aligned.
    tm, n_pad = _pick_tile(N, m_align, tm_cap)
    gm = n_pad // tm

    # 2-TensorCore split only on parts that actually report >1 core.
    if gm * gn == 1 and tm >= 2 * m_align and _num_tensorcores() >= 2:
        tm = _round_up(pl.cdiv(tm, 2), m_align)
        n_pad = 2 * tm
        gm = 2

    # Pad X only when actually misaligned (zeros are exact for the matmul).
    if (N, D) != (n_pad, k_pad):
        x = jnp.pad(x, ((0, n_pad - N), (0, k_pad - D)))

    multi_k = gk > 1
    kernel = _make_kernel(multi_k)

    if multi_k:
        grid = (gm, gn, gk)
        in_specs = [
            pl.BlockSpec((tm, tk), lambda i, j, k: (i, k)),   # X tile
            pl.BlockSpec((tk, tn), lambda i, j, k: (k, j)),   # W.T tile
            pl.BlockSpec((1, tn), lambda i, j, k: (0, j)),    # bias tile
        ]
        out_specs = pl.BlockSpec((tm, tn), lambda i, j, k: (i, j))
        dimsem = ("parallel", "parallel", "arbitrary")
    else:
        grid = (gm, gn)
        in_specs = [
            pl.BlockSpec((tm, tk), lambda i, j: (i, 0)),
            pl.BlockSpec((tk, tn), lambda i, j: (0, j)),
            pl.BlockSpec((1, tn), lambda i, j: (0, j)),
        ]
        out_specs = pl.BlockSpec((tm, tn), lambda i, j: (i, j))
        dimsem = ("parallel", "parallel")

    itemsize = jnp.dtype(x.dtype).itemsize
    cost = pl.CostEstimate(
        flops=2 * N * D * out_dim,
        transcendentals=N * out_dim,
        bytes_accessed=(N * D + D * out_dim) * itemsize + N * out_dim * 4,
    )

    out = pl.pallas_call(
        kernel,
        out_shape=jax.ShapeDtypeStruct((n_pad, o_pad), jnp.float32),
        grid_spec=pltpu.PrefetchScalarGridSpec(
            num_scalar_prefetch=0,
            grid=grid,
            in_specs=in_specs,
            out_specs=out_specs,
        ),
        compiler_params=pltpu.CompilerParams(
            dimension_semantics=dimsem,
            vmem_limit_bytes=vmem_limit,
        ),
        cost_estimate=cost,
    )(x, wt, b2)

    if (n_pad, o_pad) != (N, out_dim):
        out = out[:N, :out_dim]
    return out


# ----------------------- one-time parameter preparation ---------------------
def make_swim_forward(W, b, *, param_dtype=jnp.float32,
                      tm_target=512, tn_target=1024, tk_target=4096):
    """Hoisted parameter prep: transpose + pad W/bias once, pick tiles once.

    W: (out_dim, in_dim) nn.Linear-layout weights, b: (out_dim,) bias.
    Returns a callable forward(x) -> tanh(x @ W.T + b), float32, shape (N, out_dim).
    """
    W = jnp.asarray(W)
    b = jnp.asarray(b)
    out_dim, D = W.shape
    assert b.shape == (out_dim,)

    tm_cap, tn, tk, o_pad, k_pad, m_align, vmem_limit = _plan_tiles(
        D, out_dim, param_dtype, tm_target, tn_target, tk_target)

    # One-time prep (NOT in the per-call forward path).
    wt = W.T.astype(param_dtype)                         # (in_dim, out_dim)
    if (D, out_dim) != (k_pad, o_pad):
        wt = jnp.pad(wt, ((0, k_pad - D), (0, o_pad - out_dim)))
    b2 = b.astype(jnp.float32).reshape(1, out_dim)
    if out_dim != o_pad:
        b2 = jnp.pad(b2, ((0, 0), (0, o_pad - out_dim)))
    wt = jax.block_until_ready(wt)
    b2 = jax.block_until_ready(b2)

    def forward(x):
        return _swim_forward(
            x.astype(param_dtype), wt, b2,
            out_dim=out_dim, d=D,
            tm_cap=tm_cap, tn=tn, tk=tk,
            m_align=m_align, vmem_limit=vmem_limit,
        )

    return forward


# ----------------------- SWIM fit (parameter setup) -------------------------
def swim_fit_params(key, X, y, out_dim, epsilon=0.01):
    """Deterministic JAX re-implementation of SWIMLayer.fit ('gradient' sampling).

    Returns W (out_dim, in_dim) and b (out_dim,) in nn.Linear layout.
    This is parameter construction / glue, not the forward hot path.
    """
    # TODO(synk): torch.multinomial's exact RNG stream has no JAX equivalent;
    # jax.random.choice with the same probabilities is used instead.
    N, D = X.shape
    n = 8 * N
    k_delta, k_sel = jax.random.split(key)

    idx1 = jnp.arange(n, dtype=jnp.int32) % N
    delta = jax.random.randint(k_delta, (n,), 1, N, dtype=jnp.int32)
    idx2 = (idx1 + delta) % N

    dx = X[idx2] - X[idx1]                                   # (n, D)
    dists = jnp.maximum(
        jnp.linalg.norm(dx, axis=1, keepdims=True), jnp.float32(epsilon)
    )
    dy = y[idx2] - y[idx1]
    y_norm = jnp.linalg.norm(dy, axis=1, keepdims=True)
    grad = (y_norm / dists).reshape(-1)
    p = grad / grad.sum()

    selected = jax.random.choice(k_sel, n, shape=(out_dim,), replace=True, p=p)
    idx1_s = idx1[selected]
    dx_s = dx[selected]
    dists_s = dists[selected]

    W = dx_s / dists_s**2                                    # (out_dim, D)
    b = -jnp.einsum("ij,ij->i", W, X[idx1_s]) - 0.5          # (out_dim,)
    return W, b


# --------------------------------- main -------------------------------------
if __name__ == "__main__":
    key = jax.random.PRNGKey(0)
    k_x, k_y, k_fit = jax.random.split(key, 3)

    # ---- small main case: f32, single-K fast path, lane-padded output ------
    N, in_dim, out_dim, p = 128, 256, 192, 8
    X = jax.random.normal(k_x, (N, in_dim), dtype=jnp.float32)
    y = jax.random.normal(k_y, (N, p), dtype=jnp.float32)
    W, b = swim_fit_params(k_fit, X, y, out_dim, epsilon=0.01)

    fwd = make_swim_forward(W, b)                      # one-time prep
    out = jax.block_until_ready(fwd(X))
    ref = jnp.tanh(X @ W.T + b[None, :])
    assert out.shape == (N, out_dim)
    assert jnp.allclose(out, ref, atol=2e-4, rtol=2e-4), "f32 mismatch vs reference"

    # ---- bf16 operands, f32 accumulation (halved HBM traffic, native MXU) --
    fwd_bf16 = make_swim_forward(W, b, param_dtype=jnp.bfloat16)
    out_bf16 = jax.block_until_ready(fwd_bf16(X.astype(jnp.bfloat16)))
    ref_bf16 = jnp.tanh(
        jnp.dot(X.astype(jnp.bfloat16), W.T.astype(jnp.bfloat16),
                preferred_element_type=jnp.float32) + b[None, :]
    )
    assert jnp.allclose(out_bf16, ref_bf16, atol=2e-2, rtol=2e-2), "bf16 mismatch"

    # ---- ragged small shapes + forced K tiling (multi-K accumulate path) ---
    Ns, Ds, Os, ps = 60, 384, 40, 4
    Xs = jax.random.normal(k_x, (Ns, Ds), dtype=jnp.float32)
    ys = jax.random.normal(k_y, (Ns, ps), dtype=jnp.float32)
    Ws, bs = swim_fit_params(k_fit, Xs, ys, Os, epsilon=0.01)
    fwd_s = make_swim_forward(Ws, bs, tk_target=128)   # force gk=3
    outs = jax.block_until_ready(fwd_s(Xs))
    refs = jnp.tanh(Xs @ Ws.T + bs[None, :])
    assert outs.shape == (Ns, Os)
    assert jnp.allclose(outs, refs, atol=2e-4, rtol=2e-4), "multi-K / ragged mismatch"

    print("KERNEL_OK")
</pallas_src>

<mosaic_0001>
module attributes {stable_mosaic.version = 11 : i64} {
  func.func @kernel(%arg0: i32, %arg1: i32, %arg2: memref<128x256xf32, #tpu.memory_space<vmem>>, %arg3: memref<256x256xf32, #tpu.memory_space<vmem>>, %arg4: memref<1x256xf32, #tpu.memory_space<vmem>>, %arg5: memref<128x256xf32, #tpu.memory_space<vmem>>) attributes {dimension_semantics = [#tpu.dimension_semantics<parallel>, #tpu.dimension_semantics<parallel>], iteration_bounds = array<i64: 1, 1>, scalar_prefetch = 0 : i64, scratch_operands = 0 : i64, tpu.core_type = #tpu.core_type<tc>, window_params = [{transform_indices = @transform_0, window_bounds = array<i64: 128, 256>}, {transform_indices = @transform_1, window_bounds = array<i64: 256, 256>}, {transform_indices = @transform_2, window_bounds = array<i64: 1, 256>}, {transform_indices = @transform_3, window_bounds = array<i64: 128, 256>}]} {
    %c0 = arith.constant 0 : index
    %c0_0 = arith.constant 0 : index
    %0 = vector.load %arg2[%c0, %c0_0] : memref<128x256xf32, #tpu.memory_space<vmem>>, vector<128x256xf32>
    %c0_1 = arith.constant 0 : index
    %c0_2 = arith.constant 0 : index
    %1 = vector.load %arg3[%c0_1, %c0_2] : memref<256x256xf32, #tpu.memory_space<vmem>>, vector<256x256xf32>
    %cst = arith.constant dense<0.000000e+00> : vector<128x256xf32>
    %2 = tpu.matmul %0, %1, %cst {dimension_numbers = #tpu.dot_dimension_numbers<[1], [0], [0], [1], [0, 0, 1, 1], [], []>} : vector<128x256xf32>, vector<256x256xf32>, vector<128x256xf32> -> vector<128x256xf32>
    %c0_3 = arith.constant 0 : index
    %c0_4 = arith.constant 0 : index
    %3 = vector.load %arg4[%c0_3, %c0_4] : memref<1x256xf32, #tpu.memory_space<vmem>>, vector<1x256xf32>
    %4 = vector.broadcast %3 : vector<1x256xf32> to vector<128x256xf32>
    %5 = arith.addf %2, %4 : vector<128x256xf32>
    %6 = math.tanh %5 : vector<128x256xf32>
    %c0_5 = arith.constant 0 : index
    %c0_6 = arith.constant 0 : index
    %7 = vector.load %arg5[%c0_5, %c0_6] : memref<128x256xf32, #tpu.memory_space<vmem>>, vector<128x256xf32>
    tpu.vector_store %arg5[%c0_5, %c0_6], %6 {strides = array<i32>} : memref<128x256xf32, #tpu.memory_space<vmem>>, vector<128x256xf32>,
    return
  }
  func.func @transform_0(%arg0: i32, %arg1: i32) -> (i32, i32) {
    %c0_i32 = arith.constant 0 : i32
    %c0_i32_0 = arith.constant 0 : i32
    return %arg0, %c0_i32 : i32, i32
  }
  func.func @transform_1(%arg0: i32, %arg1: i32) -> (i32, i32) {
    %c0_i32 = arith.constant 0 : i32
    %c0_i32_0 = arith.constant 0 : i32
    return %c0_i32, %arg1 : i32, i32
  }
  func.func @transform_2(%arg0: i32, %arg1: i32) -> (i32, i32) {
    %c0_i32 = arith.constant 0 : i32
    %c0_i32_0 = arith.constant 0 : i32
    return %c0_i32, %arg1 : i32, i32
  }
  func.func @transform_3(%arg0: i32, %arg1: i32) -> (i32, i32) {
    %c0_i32 = arith.constant 0 : i32
    return %arg0, %arg1 : i32, i32
  }
}

</mosaic_0001>

<bundles_post_ra>
// kernel: _swim_forward.1
= control target key start
LH: loop header
LB: loop body
LE: loop exit
PB: predicated region body
PF: predicated region fallthrough
CT: control target
= control target key end

     0   :  { %8 = vsyncpa [#allocation3], 0  ;;  %s722_s0 = inlined_call_operand.hbm [shape: f32[128,256], index: 0, kind: input, shape index: {}]   ;;  %s723_s1 = inlined_call_operand.hbm [shape: f32[256,256], index: 1, kind: input, shape index: {}]   ;;  %s724_s2 = inlined_call_operand.vmem [shape: f32[1,256], index: 2, kind: input, shape index: {}]   ;;  %s725_s3 = inlined_call_operand.vmem [shape: f32[128,256], index: 3, kind: output, shape index: {}]  }
   0x1   :  { %9 = vsyncpa [#allocation5], 0  ;;  %s557_s12 = smov [#allocation2]  }
   0x2   :  { %s15_s13 = sshll.u32 %s557_s12, 4  ;;  %s16_s13 = int_to_ptr.vmem [resolvable:$true] %s15_s13 }
   0x3   :  { %s521_s14 = scalar_lea.vmem %s16_s13, 4096  ;;  %p526_p1 = scmp.lt.s32.totalorder %s16_s13, %s16_s13 }
   0x4   :  { %p522_p0 = scmp.ne.s32.totalorder %s16_s13, %s521_s14  ;;  %p527_p2 = scmp.lt.s32.totalorder %s521_s14, %s521_s14 }
   0x6   :  { %p528_p3 = por %p527_p2, %p526_p1 }
   0x8   :  { %p529_p4 = pnand %p528_p3, %p522_p0 }
   0xa   :  { %532 = shalt.err (!%p529_p4)
}
   0xb   :  { %s558_s15 = smov 256   ;;  %s559_s16 = smov 16  }
   0xc   :  { %21 = dma.hbm_to_vmem [thread:$0]  %s722_s0, 4096, %s16_s13, [#allocation3], %s558_s15, %s558_s15, %s559_s16  }
   0xd   :  { %s560_s19 = smov [#allocation4]  }
   0xe   :  { %s27_s20 = sshll.u32 %s560_s19, 4  ;;  %s28_s20 = int_to_ptr.vmem [resolvable:$true] %s27_s20 }
   0xf   :  { %s541_s21 = scalar_lea.vmem %s28_s20, 8192  ;;  %p546_p6 = scmp.lt.s32.totalorder %s28_s20, %s28_s20 }
  0x10   :  { %p542_p5 = scmp.ne.s32.totalorder %s28_s20, %s541_s21  ;;  %p547_p7 = scmp.lt.s32.totalorder %s541_s21, %s541_s21 }
  0x12   :  { %p548_p8 = por %p547_p7, %p546_p6 }
  0x14   :  { %p549_p9 = pnand %p548_p8, %p542_p5 }
  0x16   :  { %552 = shalt.err (!%p549_p9)
}
  0x17   :  { %33 = dma.hbm_to_vmem [thread:$0]  %s723_s1, 8192, %s28_s20, [#allocation5], %s558_s15, %s558_s15, %s559_s16  }
  0x18   :  { %553 = dma.done.wait [#allocation3], 4096  }
  0x19   :  { %554 = vsyncadd [#allocation3], 4294963200 }
  0x1a   :  { %555 = dma.done.wait [#allocation5], 8192  }
  0x1b   :  { %556 = vsyncadd [#allocation5], 4294959104  ;;  %v105_v0 = vld [vmem:[#allocation4 + $0xf8] sm:$0xff]  ;;  %v104_v1 = vld [vmem:[#allocation4 + $0xf0] sm:$0xff] }
  0x1c   :  { %v103_v2 = vld [vmem:[#allocation4 + $0xe8] sm:$0xff]  ;;  %150 = vmatprep.subr.mxu0 %v105_v0  ;;  %381 = vmatprep.subr.mxu1 %v105_v0  ;;  %v102_v3 = vld [vmem:[#allocation4 + $0xe0] sm:$0xff]  ;;  %v101_v4 = vld [vmem:[#allocation4 + $0xd8] sm:$0xff] }
  0x1d   :  { %151 = vmatpush1.msra.mxu0 %v104_v1  ;;  %413 = vmatpush1.msra.mxu1 %v104_v1  ;;  %v100_v5 = vld [vmem:[#allocation4 + $0xd0] sm:$0xff]  ;;  %v99_v6 = vld [vmem:[#allocation4 + $0xc8] sm:$0xff]  ;;  %v98_v7 = vld [vmem:[#allocation4 + $0xc0] sm:$0xff] }
  0x1e   :  { %152 = vmatprep.subr.mxu0 %v103_v2  ;;  %382 = vmatprep.subr.mxu1 %v103_v2  ;;  %v97_v8 = vld [vmem:[#allocation4 + $0xb8] sm:$0xff]  ;;  %v96_v9 = vld [vmem:[#allocation4 + $0xb0] sm:$0xff]  ;;  %v95_v10 = vld [vmem:[#allocation4 + $0xa8] sm:$0xff] }
  0x1f   :  { %153 = vmatpush1.msra.mxu0 %v102_v3  ;;  %414 = vmatpush1.msra.mxu1 %v102_v3  ;;  %v94_v11 = vld [vmem:[#allocation4 + $0xa0] sm:$0xff]  ;;  %v93_v12 = vld [vmem:[#allocation4 + $0x98] sm:$0xff]  ;;  %v92_v13 = vld [vmem:[#allocation4 + $0x90] sm:$0xff] }
  0x20   :  { %154 = vmatprep.subr.mxu0 %v101_v4  ;;  %383 = vmatprep.subr.mxu1 %v101_v4  ;;  %v91_v14 = vld [vmem:[#allocation4 + $0x88] sm:$0xff]  ;;  %v90_v15 = vld [vmem:[#allocation4 + $0x80] sm:$0xff]  ;;  %v89_v16 = vld [vmem:[#allocation4 + $0x78] sm:$0xff] }
  0x21   :  { %155 = vmatpush1.msra.mxu0 %v100_v5  ;;  %415 = vmatpush1.msra.mxu1 %v100_v5  ;;  %v88_v17 = vld [vmem:[#allocation4 + $0x70] sm:$0xff]  ;;  %v87_v18 = vld [vmem:[#allocation4 + $0x68] sm:$0xff]  ;;  %v86_v19 = vld [vmem:[#allocation4 + $0x60] sm:$0xff] }
  0x22   :  { %156 = vmatprep.subr.mxu0 %v99_v6  ;;  %384 = vmatprep.subr.mxu1 %v99_v6  ;;  %v85_v20 = vld [vmem:[#allocation4 + $0x58] sm:$0xff]  ;;  %v84_v21 = vld [vmem:[#allocation4 + $0x50] sm:$0xff]  ;;  %v83_v22 = vld [vmem:[#allocation4 + $0x48] sm:$0xff] }
  0x23   :  { %157 = vmatpush1.msra.mxu0 %v98_v7  ;;  %416 = vmatpush1.msra.mxu1 %v98_v7  ;;  %v82_v23 = vld [vmem:[#allocation4 + $0x40] sm:$0xff]  ;;  %v81_v24 = vld [vmem:[#allocation4 + $0x38] sm:$0xff]  ;;  %v80_v25 = vld [vmem:[#allocation4 + $0x30] sm:$0xff] }
  0x24   :  { %158 = vmatprep.subr.mxu0 %v97_v8  ;;  %385 = vmatprep.subr.mxu1 %v97_v8  ;;  %v79_v26 = vld [vmem:[#allocation4 + $0x28] sm:$0xff]  ;;  %v78_v27 = vld [vmem:[#allocation4 + $0x20] sm:$0xff]  ;;  %v77_v28 = vld [vmem:[#allocation4 + $0x18] sm:$0xff] }
  0x25   :  { %159 = vmatpush1.msra.mxu0 %v96_v9  ;;  %417 = vmatpush1.msra.mxu1 %v96_v9  ;;  %v76_v29 = vld [vmem:[#allocation4 + $0x10] sm:$0xff]  ;;  %v75_v30 = vld [vmem:[#allocation4 + $0x8] sm:$0xff]  ;;  %v74_v31 = vld [vmem:[#allocation4] sm:$0xff] }
  0x26   :  { %160 = vmatprep.subr.mxu0 %v95_v10  ;;  %386 = vmatprep.subr.mxu1 %v95_v10  ;;  %v137_v32 = vld [vmem:[#allocation4 + $0x1f8] sm:$0xff]  ;;  %v136_v33 = vld [vmem:[#allocation4 + $0x1f0] sm:$0xff]  ;;  %v135_v34 = vld [vmem:[#allocation4 + $0x1e8] sm:$0xff] }
  0x27   :  { %161 = vmatpush1.msra.mxu0 %v94_v11  ;;  %418 = vmatpush1.msra.mxu1 %v94_v11  ;;  %v134_v35 = vld [vmem:[#allocation4 + $0x1e0] sm:$0xff]  ;;  %v133_v36 = vld [vmem:[#allocation4 + $0x1d8] sm:$0xff]  ;;  %v132_v37 = vld [vmem:[#allocation4 + $0x1d0] sm:$0xff] }
  0x28   :  { %162 = vmatprep.subr.mxu0 %v93_v12  ;;  %387 = vmatprep.subr.mxu1 %v93_v12  ;;  %v131_v38 = vld [vmem:[#allocation4 + $0x1c8] sm:$0xff]  ;;  %v130_v39 = vld [vmem:[#allocation4 + $0x1c0] sm:$0xff]  ;;  %v129_v40 = vld [vmem:[#allocation4 + $0x1b8] sm:$0xff] }
  0x29   :  { %163 = vmatpush1.msra.mxu0 %v92_v13  ;;  %419 = vmatpush1.msra.mxu1 %v92_v13  ;;  %v128_v41 = vld [vmem:[#allocation4 + $0x1b0] sm:$0xff]  ;;  %v127_v42 = vld [vmem:[#allocation4 + $0x1a8] sm:$0xff]  ;;  %v126_v43 = vld [vmem:[#allocation4 + $0x1a0] sm:$0xff] }
  0x2a   :  { %164 = vmatprep.subr.mxu0 %v91_v14  ;;  %388 = vmatprep.subr.mxu1 %v91_v14  ;;  %v125_v44 = vld [vmem:[#allocation4 + $0x198] sm:$0xff]  ;;  %v124_v45 = vld [vmem:[#allocation4 + $0x190] sm:$0xff]  ;;  %v123_v46 = vld [vmem:[#allocation4 + $0x188] sm:$0xff] }
  0x2b   :  { %165 = vmatpush1.msra.mxu0 %v90_v15  ;;  %420 = vmatpush1.msra.mxu1 %v90_v15  ;;  %v122_v47 = vld [vmem:[#allocation4 + $0x180] sm:$0xff]  ;;  %v121_v48 = vld [vmem:[#allocation4 + $0x178] sm:$0xff]  ;;  %v120_v49 = vld [vmem:[#allocation4 + $0x170] sm:$0xff] }
  0x2c   :  { %166 = vmatprep.subr.mxu0 %v89_v16  ;;  %389 = vmatprep.subr.mxu1 %v89_v16  ;;  %v119_v50 = vld [vmem:[#allocation4 + $0x168] sm:$0xff]  ;;  %v118_v51 = vld [vmem:[#allocation4 + $0x160] sm:$0xff]  ;;  %v117_v52 = vld [vmem:[#allocation4 + $0x158] sm:$0xff] }
  0x2d   :  { %167 = vmatpush1.msra.mxu0 %v88_v17  ;;  %421 = vmatpush1.msra.mxu1 %v88_v17  ;;  %v116_v53 = vld [vmem:[#allocation4 + $0x150] sm:$0xff]  ;;  %v115_v54 = vld [vmem:[#allocation4 + $0x148] sm:$0xff]  ;;  %v114_v55 = vld [vmem:[#allocation4 + $0x140] sm:$0xff] }
  0x2e   :  { %168 = vmatprep.subr.mxu0 %v87_v18  ;;  %390 = vmatprep.subr.mxu1 %v87_v18  ;;  %v113_v56 = vld [vmem:[#allocation4 + $0x138] sm:$0xff]  ;;  %v112_v57 = vld [vmem:[#allocation4 + $0x130] sm:$0xff]  ;;  %v111_v58 = vld [vmem:[#allocation4 + $0x128] sm:$0xff] }
  0x2f   :  { %169 = vmatpush1.msra.mxu0 %v86_v19  ;;  %422 = vmatpush1.msra.mxu1 %v86_v19  ;;  %v110_v59 = vld [vmem:[#allocation4 + $0x120] sm:$0xff]  ;;  %v109_v60 = vld [vmem:[#allocation4 + $0x118] sm:$0xff]  ;;  %v108_v61 = vld [vmem:[#allocation4 + $0x110] sm:$0xff] }
  0x30   :  { %170 = vmatprep.subr.mxu0 %v85_v20  ;;  %391 = vmatprep.subr.mxu1 %v85_v20  ;;  %v107_v62 = vld [vmem:[#allocation4 + $0x108] sm:$0xff]  ;;  %v106_v63 = vld [vmem:[#allocation4 + $0x100] sm:$0xff]  ;;  %v45_v4 = vld [vmem:[#allocation2 + $0x18] sm:$0xff] }
  0x31   :  { %171 = vmatpush1.msra.mxu0 %v84_v21  ;;  %423 = vmatpush1.msra.mxu1 %v84_v21  ;;  %v43_v0 = vld [vmem:[#allocation2 + $0x8] sm:$0xff]  ;;  %v42_v2 = vld [vmem:[#allocation2] sm:$0xff]  ;;  %v61_v5 = vld [vmem:[#allocation2 + $0x98] sm:$0xff] }
  0x32   :  { %172 = vmatprep.subr.mxu0 %v83_v22  ;;  %392 = vmatprep.subr.mxu1 %v83_v22  ;;  %v59_v1 = vld [vmem:[#allocation2 + $0x88] sm:$0xff]  ;;  %v58_v3 = vld [vmem:[#allocation2 + $0x80] sm:$0xff]  ;;  %v44_v6 = vld [vmem:[#allocation2 + $0x10] sm:$0xff] }
  0x33   :  { %173 = vmatpush1.msra.mxu0 %v82_v23  ;;  %424 = vmatpush1.msra.mxu1 %v82_v23  ;;  %v60_v7 = vld [vmem:[#allocation2 + $0x90] sm:$0xff]  ;;  %v47_v8 = vld [vmem:[#allocation2 + $0x28] sm:$0xff]  ;;  %v46_v10 = vld [vmem:[#allocation2 + $0x20] sm:$0xff] }
  0x34   :  { %174 = vmatprep.subr.mxu0 %v81_v24  ;;  %393 = vmatprep.subr.mxu1 %v81_v24  ;;  %v63_v9 = vld [vmem:[#allocation2 + $0xa8] sm:$0xff]  ;;  %v62_v11 = vld [vmem:[#allocation2 + $0xa0] sm:$0xff]  ;;  %v49_v12 = vld [vmem:[#allocation2 + $0x38] sm:$0xff] }
  0x35   :  { %175 = vmatpush1.msra.mxu0 %v80_v25  ;;  %425 = vmatpush1.msra.mxu1 %v80_v25  ;;  %v65_v13 = vld [vmem:[#allocation2 + $0xb8] sm:$0xff]  ;;  %v48_v14 = vld [vmem:[#allocation2 + $0x30] sm:$0xff]  ;;  %v51_v16 = vld [vmem:[#allocation2 + $0x48] sm:$0xff] }
  0x36   :  { %176 = vmatprep.subr.mxu0 %v79_v26  ;;  %394 = vmatprep.subr.mxu1 %v79_v26  ;;  %v64_v15 = vld [vmem:[#allocation2 + $0xb0] sm:$0xff]  ;;  %v67_v17 = vld [vmem:[#allocation2 + $0xc8] sm:$0xff]  ;;  %v50_v18 = vld [vmem:[#allocation2 + $0x40] sm:$0xff] }
  0x37   :  { %177 = vmatpush1.msra.mxu0 %v78_v27  ;;  %426 = vmatpush1.msra.mxu1 %v78_v27  ;;  %v66_v19 = vld [vmem:[#allocation2 + $0xc0] sm:$0xff]  ;;  %v53_v20 = vld [vmem:[#allocation2 + $0x58] sm:$0xff]  ;;  %v52_v22 = vld [vmem:[#allocation2 + $0x50] sm:$0xff] }
  0x38   :  { %178 = vmatprep.subr.mxu0 %v77_v28  ;;  %395 = vmatprep.subr.mxu1 %v77_v28  ;;  %v69_v21 = vld [vmem:[#allocation2 + $0xd8] sm:$0xff]  ;;  %v68_v23 = vld [vmem:[#allocation2 + $0xd0] sm:$0xff]  ;;  %v55_v24 = vld [vmem:[#allocation2 + $0x68] sm:$0xff] }
  0x39   :  { %179 = vmatpush1.msra.mxu0 %v76_v29  ;;  %427 = vmatpush1.msra.mxu1 %v76_v29  ;;  %v71_v25 = vld [vmem:[#allocation2 + $0xe8] sm:$0xff]  ;;  %v54_v26 = vld [vmem:[#allocation2 + $0x60] sm:$0xff]  ;;  %v57_v28 = vld [vmem:[#allocation2 + $0x78] sm:$0xff] }
  0x3a   :  { %180 = vmatprep.subr.mxu0 %v75_v30  ;;  %396 = vmatprep.subr.mxu1 %v75_v30  ;;  %v70_v27 = vld [vmem:[#allocation2 + $0xe0] sm:$0xff]  ;;  %v73_v29 = vld [vmem:[#allocation2 + $0xf8] sm:$0xff]  ;;  %v56_v30 = vld [vmem:[#allocation2 + $0x70] sm:$0xff] }
  0x3b   :  { %181 = vmatpush1.msra.mxu0 %v74_v31  ;;  %428 = vmatpush1.msra.mxu1 %v74_v31  ;;  %v72_v31 = vld [vmem:[#allocation2 + $0xf0] sm:$0xff] }
  0x3c   :  { %182 = vmatprep.subr.mxu0 %v137_v32  ;;  %397 = vmatprep.subr.mxu1 %v137_v32  ;;  %v140_v32 = vlaneseq }
  0x3d   :  { %183 = vmatpush2.msra.mxu0 %v136_v33  ;;  %429 = vmatpush2.msra.mxu1 %v136_v33 }
  0x3e   :  { %184 = vmatprep.subr.mxu0 %v135_v34  ;;  %398 = vmatprep.subr.mxu1 %v135_v34  ;;  %v141_v33 = vshrl.u32 %v140_v32, 7 }
  0x3f   :  { %185 = vmatpush2.msra.mxu0 %v134_v35  ;;  %430 = vmatpush2.msra.mxu1 %v134_v35  ;;  %v138_v35 = vld [vmem:[%s724_s2] sm:$0x3] }
  0x40   :  { %186 = vmatprep.subr.mxu0 %v133_v36  ;;  %399 = vmatprep.subr.mxu1 %v133_v36  ;;  %v142_v34 = vsub.s32 0, %v141_v33  ;;  %v146_v36 = vsub.s32 1, %v141_v33 }
  0x41   :  { %187 = vmatpush2.msra.mxu0 %v132_v37  ;;  %431 = vmatpush2.msra.mxu1 %v132_v37 }
  0x42   :  { %188 = vmatprep.subr.mxu0 %v131_v38  ;;  %400 = vmatprep.subr.mxu1 %v131_v38  ;;  %v590_v37 = vrot.slane %v138_v35, %v142_v34  ;;  %v592_v38 = vrot.slane %v138_v35, %v146_v36 }
  0x43   :  { %189 = vmatpush2.msra.mxu0 %v130_v39  ;;  %432 = vmatpush2.msra.mxu1 %v130_v39 }
  0x44   :  { %190 = vmatprep.subr.mxu0 %v129_v40  ;;  %401 = vmatprep.subr.mxu1 %v129_v40 }
  0x45   :  { %191 = vmatpush2.msra.mxu0 %v128_v41  ;;  %433 = vmatpush2.msra.mxu1 %v128_v41 }
  0x46   :  { %192 = vmatprep.subr.mxu0 %v127_v42  ;;  %402 = vmatprep.subr.mxu1 %v127_v42 }
  0x47   :  { %193 = vmatpush2.msra.mxu0 %v126_v43  ;;  %434 = vmatpush2.msra.mxu1 %v126_v43 }
  0x48   :  { %194 = vmatprep.subr.mxu0 %v125_v44  ;;  %403 = vmatprep.subr.mxu1 %v125_v44 }
  0x49   :  { %195 = vmatpush2.msra.mxu0 %v124_v45  ;;  %435 = vmatpush2.msra.mxu1 %v124_v45 }
  0x4a   :  { %196 = vmatprep.subr.mxu0 %v123_v46  ;;  %404 = vmatprep.subr.mxu1 %v123_v46 }
  0x4b   :  { %197 = vmatpush2.msra.mxu0 %v122_v47  ;;  %436 = vmatpush2.msra.mxu1 %v122_v47 }
  0x4c   :  { %198 = vmatprep.subr.mxu0 %v121_v48  ;;  %405 = vmatprep.subr.mxu1 %v121_v48 }
  0x4d   :  { %199 = vmatpush2.msra.mxu0 %v120_v49  ;;  %437 = vmatpush2.msra.mxu1 %v120_v49 }
  0x4e   :  { %200 = vmatprep.subr.mxu0 %v119_v50  ;;  %406 = vmatprep.subr.mxu1 %v119_v50 }
  0x4f   :  { %201 = vmatpush2.msra.mxu0 %v118_v51  ;;  %438 = vmatpush2.msra.mxu1 %v118_v51 }
  0x50   :  { %202 = vmatprep.subr.mxu0 %v117_v52  ;;  %407 = vmatprep.subr.mxu1 %v117_v52 }
  0x51   :  { %203 = vmatpush2.msra.mxu0 %v116_v53  ;;  %439 = vmatpush2.msra.mxu1 %v116_v53 }
  0x52   :  { %204 = vmatprep.subr.mxu0 %v115_v54  ;;  %408 = vmatprep.subr.mxu1 %v115_v54 }
  0x53   :  { %205 = vmatpush2.msra.mxu0 %v114_v55  ;;  %440 = vmatpush2.msra.mxu1 %v114_v55 }
  0x54   :  { %206 = vmatprep.subr.mxu0 %v113_v56  ;;  %409 = vmatprep.subr.mxu1 %v113_v56 }
  0x55   :  { %207 = vmatpush2.msra.mxu0 %v112_v57  ;;  %441 = vmatpush2.msra.mxu1 %v112_v57 }
  0x56   :  { %208 = vmatprep.subr.mxu0 %v111_v58  ;;  %410 = vmatprep.subr.mxu1 %v111_v58 }
  0x57   :  { %209 = vmatpush2.msra.mxu0 %v110_v59  ;;  %442 = vmatpush2.msra.mxu1 %v110_v59 }
  0x58   :  { %210 = vmatprep.subr.mxu0 %v109_v60  ;;  %411 = vmatprep.subr.mxu1 %v109_v60 }
  0x59   :  { %211 = vmatpush2.msra.mxu0 %v108_v61  ;;  %443 = vmatpush2.msra.mxu1 %v108_v61 }
  0x5a   :  { %212 = vmatprep.subr.mxu0 %v107_v62  ;;  %412 = vmatprep.subr.mxu1 %v107_v62 }
  0x5b   :  { %213 = vmatpush2.msra.mxu0 %v106_v63  ;;  %444 = vmatpush2.msra.mxu1 %v106_v63 }
  0x5c   :  { %214 = vmatprep.mubr.f32.mxu0 %v43_v0  ;;  %262 = vmatprep.mubr.f32.mxu1 %v59_v1 }
  0x5d   :  { %215 = vmatmul.mubr.f32.vlgmr.msra.gmra.mxu0 %v42_v2  ;;  %263 = vmatmul.mubr.f32.vlgmr.msra.gmra.mxu1 %v58_v3 }
  0x5e   :  { %220 = vmatprep.mubr.f32.mxu0 %v45_v4  ;;  %268 = vmatprep.mubr.f32.mxu1 %v61_v5 }
  0x61   :  { %221 = vmatmul.mubr.f32.gmra.mxu0 %v44_v6  ;;  %269 = vmatmul.mubr.f32.gmra.mxu1 %v60_v7 }
  0x62   :  { %226 = vmatprep.mubr.f32.mxu0 %v47_v8  ;;  %274 = vmatprep.mubr.f32.mxu1 %v63_v9 }
  0x65   :  { %227 = vmatmul.mubr.f32.gmra.mxu0 %v46_v10  ;;  %275 = vmatmul.mubr.f32.gmra.mxu1 %v62_v11 }
  0x66   :  { %232 = vmatprep.mubr.f32.mxu0 %v49_v12  ;;  %280 = vmatprep.mubr.f32.mxu1 %v65_v13 }
  0x69   :  { %233 = vmatmul.mubr.f32.gmra.mxu0 %v48_v14  ;;  %281 = vmatmul.mubr.f32.gmra.mxu1 %v64_v15 }
  0x6a   :  { %238 = vmatprep.mubr.f32.mxu0 %v51_v16  ;;  %286 = vmatprep.mubr.f32.mxu1 %v67_v17 }
  0x6d   :  { %239 = vmatmul.mubr.f32.gmra.mxu0 %v50_v18  ;;  %287 = vmatmul.mubr.f32.gmra.mxu1 %v66_v19 }
  0x6e   :  { %244 = vmatprep.mubr.f32.mxu0 %v53_v20  ;;  %292 = vmatprep.mubr.f32.mxu1 %v69_v21 }
  0x71   :  { %245 = vmatmul.mubr.f32.gmra.mxu0 %v52_v22  ;;  %293 = vmatmul.mubr.f32.gmra.mxu1 %v68_v23 }
  0x72   :  { %250 = vmatprep.mubr.f32.mxu0 %v55_v24  ;;  %298 = vmatprep.mubr.f32.mxu1 %v71_v25 }
  0x75   :  { %251 = vmatmul.mubr.f32.gmra.mxu0 %v54_v26  ;;  %299 = vmatmul.mubr.f32.gmra.mxu1 %v70_v27 }
  0x76   :  { %256 = vmatprep.mubr.f32.mxu0 %v57_v28  ;;  %304 = vmatprep.mubr.f32.mxu1 %v73_v29 }
  0x79   :  { %257 = vmatmul.mubr.f32.gmra.mxu0 %v56_v30  ;;  %305 = vmatmul.mubr.f32.gmra.mxu1 %v72_v31 }
 0x11d   :  { %v216_v39 = vpop.f32.mrf.mxu0  ;;  %v264_v40 = vpop.f32.mrf.mxu1 }
 0x11e   :  { %v217_v41 = vadd.f32 %v216_v39, %v590_v37  ;;  %v265_v42 = vadd.f32 %v264_v40, %v590_v37 }
 0x11f   :  { %v218_v43 = vpop.f32.mrf.mxu0  ;;  %v266_v44 = vpop.f32.mrf.mxu1 }
 0x120   :  { %449 = vtanh.f32 %v217_v41  ;;  %v219_v45 = vadd.f32 %v218_v43, %v592_v38  ;;  %v267_v46 = vadd.f32 %v266_v44, %v592_v38 }
 0x121   :  { %451 = vtanh.f32 %v265_v42  ;;  %v222_v47 = vpop.f32.mrf.mxu0  ;;  %v270_v48 = vpop.f32.mrf.mxu1 }
 0x122   :  { %453 = vtanh.f32 %v219_v45  ;;  %v223_v49 = vadd.f32 %v222_v47, %v590_v37  ;;  %v271_v50 = vadd.f32 %v270_v48, %v590_v37 }
 0x123   :  { %455 = vtanh.f32 %v267_v46  ;;  %v224_v51 = vpop.f32.mrf.mxu0  ;;  %v272_v52 = vpop.f32.mrf.mxu1 }
 0x124   :  { %457 = vtanh.f32 %v223_v49  ;;  %v225_v53 = vadd.f32 %v224_v51, %v592_v38  ;;  %v273_v54 = vadd.f32 %v272_v52, %v592_v38 }
 0x125   :  { %459 = vtanh.f32 %v271_v50  ;;  %v228_v55 = vpop.f32.mrf.mxu0  ;;  %v276_v56 = vpop.f32.mrf.mxu1 }
 0x126   :  { %461 = vtanh.f32 %v225_v53  ;;  %v229_v57 = vadd.f32 %v228_v55, %v590_v37  ;;  %v277_v58 = vadd.f32 %v276_v56, %v590_v37 }
 0x127   :  { %463 = vtanh.f32 %v273_v54  ;;  %v230_v59 = vpop.f32.mrf.mxu0  ;;  %v278_v60 = vpop.f32.mrf.mxu1 }
 0x128   :  { %465 = vtanh.f32 %v229_v57  ;;  %v231_v61 = vadd.f32 %v230_v59, %v592_v38  ;;  %v279_v62 = vadd.f32 %v278_v60, %v592_v38 }
 0x129   :  { %467 = vtanh.f32 %v277_v58  ;;  %v234_v63 = vpop.f32.mrf.mxu0  ;;  %v282_v0 = vpop.f32.mrf.mxu1 }
 0x12a   :  { %469 = vtanh.f32 %v231_v61  ;;  %v235_v1 = vadd.f32 %v234_v63, %v590_v37  ;;  %v283_v2 = vadd.f32 %v282_v0, %v590_v37 }
 0x12b   :  { %471 = vtanh.f32 %v279_v62  ;;  %v236_v3 = vpop.f32.mrf.mxu0  ;;  %v284_v4 = vpop.f32.mrf.mxu1 }
 0x12c   :  { %473 = vtanh.f32 %v235_v1  ;;  %v237_v5 = vadd.f32 %v236_v3, %v592_v38  ;;  %v285_v6 = vadd.f32 %v284_v4, %v592_v38 }
 0x12d   :  { %v450_v7 = vpop.eup %449  ;;  %475 = vtanh.f32 %v283_v2  ;;  %v240_v8 = vpop.f32.mrf.mxu0 }
 0x12e   :  { %v288_v9 = vpop.f32.mrf.mxu1  ;;  %v452_v10 = vpop.eup %451  ;;  %343 = vst [vmem:[%s725_s3] sm:$0xff] %v450_v7  ;;  %477 = vtanh.f32 %v237_v5  ;;  %v241_v11 = vadd.f32 %v240_v8, %v590_v37 }
 0x12f   :  { %v289_v12 = vadd.f32 %v288_v9, %v590_v37  ;;  %v454_v13 = vpop.eup %453  ;;  %359 = vst [vmem:[%s725_s3 + $0x80] sm:$0xff] %v452_v10  ;;  %479 = vtanh.f32 %v285_v6  ;;  %v242_v14 = vpop.f32.mrf.mxu0 }
 0x130   :  { %v290_v15 = vpop.f32.mrf.mxu1  ;;  %v456_v16 = vpop.eup %455  ;;  %344 = vst [vmem:[%s725_s3 + $0x8] sm:$0xff] %v454_v13  ;;  %481 = vtanh.f32 %v241_v11  ;;  %v243_v17 = vadd.f32 %v242_v14, %v592_v38 }
 0x131   :  { %v291_v18 = vadd.f32 %v290_v15, %v592_v38  ;;  %v458_v19 = vpop.eup %457  ;;  %360 = vst [vmem:[%s725_s3 + $0x88] sm:$0xff] %v456_v16  ;;  %483 = vtanh.f32 %v289_v12  ;;  %v246_v20 = vpop.f32.mrf.mxu0 }
 0x132   :  { %v294_v21 = vpop.f32.mrf.mxu1  ;;  %v460_v22 = vpop.eup %459  ;;  %345 = vst [vmem:[%s725_s3 + $0x10] sm:$0xff] %v458_v19  ;;  %485 = vtanh.f32 %v243_v17  ;;  %v247_v23 = vadd.f32 %v246_v20, %v590_v37 }
 0x133   :  { %v295_v24 = vadd.f32 %v294_v21, %v590_v37  ;;  %v462_v25 = vpop.eup %461  ;;  %361 = vst [vmem:[%s725_s3 + $0x90] sm:$0xff] %v460_v22  ;;  %487 = vtanh.f32 %v291_v18  ;;  %v248_v26 = vpop.f32.mrf.mxu0 }
 0x134   :  { %v296_v27 = vpop.f32.mrf.mxu1  ;;  %v464_v28 = vpop.eup %463  ;;  %346 = vst [vmem:[%s725_s3 + $0x18] sm:$0xff] %v462_v25  ;;  %489 = vtanh.f32 %v247_v23  ;;  %v249_v29 = vadd.f32 %v248_v26, %v592_v38 }
 0x135   :  { %v297_v30 = vadd.f32 %v296_v27, %v592_v38  ;;  %v466_v31 = vpop.eup %465  ;;  %362 = vst [vmem:[%s725_s3 + $0x98] sm:$0xff] %v464_v28  ;;  %491 = vtanh.f32 %v295_v24  ;;  %v252_v32 = vpop.f32.mrf.mxu0 }
 0x136   :  { %v300_v33 = vpop.f32.mrf.mxu1  ;;  %v468_v34 = vpop.eup %467  ;;  %347 = vst [vmem:[%s725_s3 + $0x20] sm:$0xff] %v466_v31  ;;  %493 = vtanh.f32 %v249_v29  ;;  %v253_v35 = vadd.f32 %v252_v32, %v590_v37 }
 0x137   :  { %v301_v36 = vadd.f32 %v300_v33, %v590_v37  ;;  %v470_v39 = vpop.eup %469  ;;  %363 = vst [vmem:[%s725_s3 + $0xa0] sm:$0xff] %v468_v34  ;;  %495 = vtanh.f32 %v297_v30  ;;  %v254_v40 = vpop.f32.mrf.mxu0 }
 0x138   :  { %v302_v41 = vpop.f32.mrf.mxu1  ;;  %v472_v42 = vpop.eup %471  ;;  %348 = vst [vmem:[%s725_s3 + $0x28] sm:$0xff] %v470_v39  ;;  %497 = vtanh.f32 %v253_v35  ;;  %v255_v43 = vadd.f32 %v254_v40, %v592_v38 }
 0x139   :  { %v303_v44 = vadd.f32 %v302_v41, %v592_v38  ;;  %v474_v45 = vpop.eup %473  ;;  %364 = vst [vmem:[%s725_s3 + $0xa8] sm:$0xff] %v472_v42  ;;  %499 = vtanh.f32 %v301_v36  ;;  %v258_v46 = vpop.f32.mrf.mxu0 }
 0x13a   :  { %v306_v47 = vpop.f32.mrf.mxu1  ;;  %v476_v48 = vpop.eup %475  ;;  %349 = vst [vmem:[%s725_s3 + $0x30] sm:$0xff] %v474_v45  ;;  %501 = vtanh.f32 %v255_v43  ;;  %v259_v49 = vadd.f32 %v258_v46, %v590_v37 }
 0x13b   :  { %v307_v50 = vadd.f32 %v306_v47, %v590_v37  ;;  %v478_v51 = vpop.eup %477  ;;  %365 = vst [vmem:[%s725_s3 + $0xb0] sm:$0xff] %v476_v48  ;;  %503 = vtanh.f32 %v303_v44  ;;  %v260_v52 = vpop.f32.mrf.mxu0 }
 0x13c   :  { %v308_v53 = vpop.f32.mrf.mxu1  ;;  %v480_v54 = vpop.eup %479  ;;  %350 = vst [vmem:[%s725_s3 + $0x38] sm:$0xff] %v478_v51  ;;  %505 = vtanh.f32 %v259_v49  ;;  %v261_v55 = vadd.f32 %v260_v52, %v592_v38 }
 0x13d   :  { %v309_v56 = vadd.f32 %v308_v53, %v592_v38  ;;  %v482_v57 = vpop.eup %481  ;;  %366 = vst [vmem:[%s725_s3 + $0xb8] sm:$0xff] %v480_v54  ;;  %507 = vtanh.f32 %v307_v50 }
 0x13e   :  { %v484_v37 = vpop.eup %483  ;;  %351 = vst [vmem:[%s725_s3 + $0x40] sm:$0xff] %v482_v57  ;;  %509 = vtanh.f32 %v261_v55 }
 0x13f   :  { %v486_v58 = vpop.eup %485  ;;  %367 = vst [vmem:[%s725_s3 + $0xc0] sm:$0xff] %v484_v37  ;;  %511 = vtanh.f32 %v309_v56 }
 0x140   :  { %v488_v59 = vpop.eup %487  ;;  %352 = vst [vmem:[%s725_s3 + $0x48] sm:$0xff] %v486_v58 }
 0x141   :  { %v490_v38 = vpop.eup %489  ;;  %368 = vst [vmem:[%s725_s3 + $0xc8] sm:$0xff] %v488_v59 }
 0x142   :  { %v492_v60 = vpop.eup %491  ;;  %353 = vst [vmem:[%s725_s3 + $0x50] sm:$0xff] %v490_v38 }
 0x143   :  { %v494_v61 = vpop.eup %493  ;;  %369 = vst [vmem:[%s725_s3 + $0xd0] sm:$0xff] %v492_v60 }
 0x144   :  { %v496_v62 = vpop.eup %495  ;;  %354 = vst [vmem:[%s725_s3 + $0x58] sm:$0xff] %v494_v61 }
 0x145   :  { %v498_v63 = vpop.eup %497  ;;  %370 = vst [vmem:[%s725_s3 + $0xd8] sm:$0xff] %v496_v62 }
 0x146   :  { %v500_v0 = vpop.eup %499  ;;  %355 = vst [vmem:[%s725_s3 + $0x60] sm:$0xff] %v498_v63 }
 0x147   :  { %v502_v1 = vpop.eup %501  ;;  %371 = vst [vmem:[%s725_s3 + $0xe0] sm:$0xff] %v500_v0 }
 0x148   :  { %v504_v2 = vpop.eup %503  ;;  %356 = vst [vmem:[%s725_s3 + $0x68] sm:$0xff] %v502_v1 }
 0x149   :  { %v506_v3 = vpop.eup %505  ;;  %372 = vst [vmem:[%s725_s3 + $0xe8] sm:$0xff] %v504_v2 }
 0x14a   :  { %v508_v4 = vpop.eup %507  ;;  %357 = vst [vmem:[%s725_s3 + $0x70] sm:$0xff] %v506_v3 }
 0x14b   :  { %v510_v5 = vpop.eup %509  ;;  %373 = vst [vmem:[%s725_s3 + $0xf0] sm:$0xff] %v508_v4 }
 0x14c   :  { %v512_v6 = vpop.eup %511  ;;  %358 = vst [vmem:[%s725_s3 + $0x78] sm:$0xff] %v510_v5 }
 0x14d   :  { %374 = vst [vmem:[%s725_s3 + $0xf8] sm:$0xff] %v512_v6 }
 0x14e   :  { %379 = vsyncpa [#allocation3], 1 }
 0x14f   :  { %380 = vsyncpa [#allocation5], 1 }

</bundles_post_ra>
